<compile_context>
chip_gen: v5e
topology: v5e:2x2
jax: 0.10.0
libtpu: 0.0.40
codegen_flags: <defaults>
</compile_context>

<pallas_src>
import functools

import jax
import jax.numpy as jnp
from jax.experimental import pallas as pl
from jax.experimental.pallas import tpu as pltpu


# ---------------------------------------------------------------------------
# Kernels
# ---------------------------------------------------------------------------

def _fused_se_kernel(x_ref, w1_ref, b1_ref, w2_ref, b2_ref, o_ref, *, inv_hw):
    """Bt batch elements per grid step: pool + excite + scale, single read of x."""
    x = x_ref[...]                                                      # (Bt, C, HW)
    # Squeeze: per-(b, c) mean, f32 accumulation, precomputed 1/HW.
    mean = jnp.sum(x, axis=-1, dtype=jnp.float32) * inv_hw              # (Bt, C)
    # Excite: contract against the weights in their native (out, in) layout
    # (A @ W^T form -> no in-kernel transpose of the weights).
    h = jax.lax.dot_general(mean, w1_ref[...], (((1,), (1,)), ((), ())),
                            preferred_element_type=jnp.float32) + b1_ref[...]   # (Bt, Cr)
    h = jnp.maximum(h, 0.0)
    g = jax.lax.dot_general(h, w2_ref[...], (((1,), (1,)), ((), ())),
                            preferred_element_type=jnp.float32) + b2_ref[...]   # (Bt, C)
    s = jax.nn.sigmoid(g)                                               # (Bt, C), f32
    # Scale: multiply in f32 (x promotes), one cast on the store.
    o_ref[...] = (x * s[:, :, None]).astype(o_ref.dtype)


def _pool_excite_kernel(x_ref, w1_ref, b1_ref, w2_ref, b2_ref, s_ref, *,
                        inv_hw, hw_total, masked):
    """Pass 1: accumulate per-channel sums over HW tiles; excite on the last tile."""
    hw_idx = pl.program_id(1)

    @pl.when(hw_idx == 0)
    def _init():
        s_ref[...] = jnp.zeros_like(s_ref)

    x = x_ref[0]                                                        # (C, tile)
    if masked:
        # Tail tile does not fill the block: zero the out-of-range lanes so they
        # do not pollute the pooled sum (reads of padded regions are unspecified).
        tile = x.shape[-1]
        lane = jax.lax.broadcasted_iota(jnp.int32, x.shape, 1)
        x = jnp.where(lane < (hw_total - hw_idx * tile), x, jnp.zeros_like(x))
    s_ref[0] += jnp.sum(x, axis=-1, keepdims=True, dtype=jnp.float32)   # f32 accumulation

    @pl.when(hw_idx == pl.num_programs(1) - 1)
    def _finalize():
        mean = s_ref[0] * inv_hw                                        # (C, 1)
        h = jnp.dot(w1_ref[...], mean, preferred_element_type=jnp.float32) + b1_ref[...]
        h = jnp.maximum(h, 0.0)
        g = jnp.dot(w2_ref[...], h, preferred_element_type=jnp.float32) + b2_ref[...]
        s_ref[0] = jax.nn.sigmoid(g)                                    # gate, f32


def _scale_kernel(x_ref, s_ref, o_ref):
    """Pass 2: out = x * gate; f32 multiply, single cast on the store."""
    o_ref[...] = (x_ref[...] * s_ref[...]).astype(o_ref.dtype)


# ---------------------------------------------------------------------------
# Wrapper helpers
# ---------------------------------------------------------------------------

def _physical_vmem_bytes():
    """Per-TensorCore VMEM; falls back to the most conservative value (v7x, 64 MiB)."""
    default = 64 << 20
    get_info = getattr(pltpu, "get_tpu_info", None)
    if get_info is None:
        return default
    try:
        cap = getattr(get_info(), "vmem_capacity_bytes", None)
        return int(cap) if cap else default
    except Exception:
        return default


def _vmem_limit(need_bytes, cap_bytes):
    """Scoped-VMEM limit: 1.25x headroom over the accounted need, floored at the
    32 MiB default and capped below physical VMEM (Mosaic internal-scratch room)."""
    return int(min(max(need_bytes * 5 // 4, 32 << 20), cap_bytes))


def _pick_hw_tile(hw, c, itemsize, tile_budget):
    """Byte-budgeted HW tile: a multiple of 128 lanes with a 512-lane floor."""
    if hw <= 512:
        return hw                       # single full-HW block (full dim: no alignment needed)
    t = (tile_budget // max(c * itemsize, 1)) // 128 * 128
    t = max(t, 512)                     # keep per-channel HBM runs DMA-efficient
    return hw if t >= hw else t


# ---------------------------------------------------------------------------
# Wrapper
# ---------------------------------------------------------------------------

def se_module(x_nchw, w1, b1, w2, b2, *, force_two_pass=False, hw_tile=None,
              batch_tile=None):
    """SE forward. x_nchw: (B,C,H,W); w1: (Cr,C); b1: (Cr,); w2: (C,Cr); b2: (C,)."""
    B, C, H, W = x_nchw.shape
    Cr = w1.shape[0]
    HW = H * W
    inv_hw = 1.0 / float(HW)

    # Free layout change: collapse spatial dims (C on sublanes, HW on lanes).
    x = x_nchw.reshape(B, C, HW)

    itemsize = jnp.dtype(x_nchw.dtype).itemsize
    per_batch_bytes = C * HW * itemsize
    # Constant-index weight/bias blocks are still double-buffered by default -> 2x.
    weight_bytes = 2 * (w1.size * w1.dtype.itemsize + b1.size * b1.dtype.itemsize +
                        w2.size * w2.dtype.itemsize + b2.size * b2.dtype.itemsize)

    # Generation-aware budgets (128 MiB VMEM on v5e/v6e, 64 MiB on v7x).
    physical = _physical_vmem_bytes()
    vmem_cap = max(physical - (8 << 20), 32 << 20)     # headroom for Mosaic scratch
    fused_budget = physical * 3 // 4                   # ~96 MiB v5e/v6e, ~48 MiB v7x
    block_target = (8 << 20) if physical >= (96 << 20) else (4 << 20)

    # Fused block groups Bt batch elements (~block_target bytes per block).
    if batch_tile is not None:
        bt = max(1, min(int(batch_tile), B))
    else:
        bt = max(1, min(B, block_target // max(per_batch_bytes, 1)))
    block_bytes = bt * per_batch_bytes
    f32_tmp = bt * C * HW * 4 if itemsize < 4 else 0   # f32 multiply intermediate (bf16 x)
    fused_need = 4 * block_bytes + f32_tmp + weight_bytes + (1 << 20)
    use_fused = (not force_two_pass) and fused_need <= fused_budget

    if use_fused:
        nb = pl.cdiv(B, bt)
        b1f = b1.reshape(1, Cr)
        b2f = b2.reshape(1, C)
        out = pl.pallas_call(
            functools.partial(_fused_se_kernel, inv_hw=inv_hw),
            out_shape=jax.ShapeDtypeStruct((B, C, HW), x_nchw.dtype),
            grid_spec=pltpu.PrefetchScalarGridSpec(
                num_scalar_prefetch=0,
                grid=(nb,),
                in_specs=[
                    pl.BlockSpec((bt, C, HW), lambda i: (i, 0, 0)),
                    pl.BlockSpec((Cr, C), lambda i: (0, 0)),
                    pl.BlockSpec((1, Cr), lambda i: (0, 0)),
                    pl.BlockSpec((C, Cr), lambda i: (0, 0)),
                    pl.BlockSpec((1, C), lambda i: (0, 0)),
                ],
                out_specs=pl.BlockSpec((bt, C, HW), lambda i: (i, 0, 0)),
            ),
            compiler_params=pltpu.CompilerParams(
                dimension_semantics=("parallel",),
                vmem_limit_bytes=_vmem_limit(fused_need, vmem_cap)),
        )(x, w1, b1f, w2, b2f)
        return out.reshape(B, C, H, W)

    # ---------------- two-pass tiled path (slabs too large to stay fused) -----------
    if hw_tile is not None:
        tile = min(int(hw_tile), HW)
        if tile < HW and tile % 128 != 0:
            raise ValueError("hw_tile must be a multiple of 128 (or >= H*W)")
    else:
        tile = _pick_hw_tile(HW, C, itemsize, block_target)
    n_hw = pl.cdiv(HW, tile)
    masked = (HW % tile) != 0           # tail tile handled with an in-kernel lane mask

    b1c = b1.reshape(Cr, 1)
    b2c = b2.reshape(C, 1)

    # TODO(synk): for B == 1 on v7x, pass 1 runs on a single TensorCore (its only
    # 'parallel' axis is B); splitting the HW accumulation across both cores with
    # per-core partial sums + a tiny combine would recover ~2x HBM bandwidth.
    pool_need = 2 * (C * tile * itemsize) + 2 * (C * 4) + weight_bytes + (1 << 20)
    gate = pl.pallas_call(
        functools.partial(_pool_excite_kernel, inv_hw=inv_hw, hw_total=HW,
                          masked=masked),
        out_shape=jax.ShapeDtypeStruct((B, C, 1), jnp.float32),
        grid_spec=pltpu.PrefetchScalarGridSpec(
            num_scalar_prefetch=0,
            grid=(B, n_hw),
            in_specs=[
                pl.BlockSpec((1, C, tile), lambda b, h: (b, 0, h)),
                pl.BlockSpec((Cr, C), lambda b, h: (0, 0)),
                pl.BlockSpec((Cr, 1), lambda b, h: (0, 0)),
                pl.BlockSpec((C, Cr), lambda b, h: (0, 0)),
                pl.BlockSpec((C, 1), lambda b, h: (0, 0)),
            ],
            out_specs=pl.BlockSpec((1, C, 1), lambda b, h: (b, 0, 0)),
        ),
        compiler_params=pltpu.CompilerParams(
            dimension_semantics=("parallel", "arbitrary"),
            vmem_limit_bytes=_vmem_limit(pool_need, vmem_cap)),
    )(x, w1, b1c, w2, b2c)

    scale_tmp = C * tile * 4 if itemsize < 4 else 0
    scale_need = 4 * (C * tile * itemsize) + scale_tmp + 2 * (C * 4) + (1 << 20)
    out = pl.pallas_call(
        _scale_kernel,
        out_shape=jax.ShapeDtypeStruct((B, C, HW), x_nchw.dtype),
        grid_spec=pltpu.PrefetchScalarGridSpec(
            num_scalar_prefetch=0,
            grid=(B, n_hw),
            in_specs=[
                pl.BlockSpec((1, C, tile), lambda b, h: (b, 0, h)),
                pl.BlockSpec((1, C, 1), lambda b, h: (b, 0, 0)),
            ],
            out_specs=pl.BlockSpec((1, C, tile), lambda b, h: (b, 0, h)),
        ),
        compiler_params=pltpu.CompilerParams(
            dimension_semantics=("parallel", "parallel"),
            vmem_limit_bytes=_vmem_limit(scale_need, vmem_cap)),
    )(x, gate)
    return out.reshape(B, C, H, W)


# ---------------------------------------------------------------------------
# Reference + demo
# ---------------------------------------------------------------------------

def _reference(x_nchw, w1, b1, w2, b2):
    """Plain-JAX reference mirroring the PyTorch forward."""
    pooled = jnp.mean(x_nchw, axis=(2, 3))                     # (B, C)
    h = jnp.maximum(pooled @ w1.T + b1, 0.0)                   # (B, Cr)
    s = jax.nn.sigmoid(h @ w2.T + b2)                          # (B, C)
    return x_nchw * s[:, :, None, None]


if __name__ == "__main__":
    key = jax.random.PRNGKey(0)
    keys = jax.random.split(key, 11)

    # --- primary small shapes: (B, C, H, W) = (2, 4, 16, 16), reduction = 2 ---
    B, C, H, W = 2, 4, 16, 16
    Cr = C // 2
    x = jax.random.normal(keys[0], (B, C, H, W), dtype=jnp.float32)
    # Deterministic synthetic params matching nn.Conv2d(C, Cr, 1) / nn.Conv2d(Cr, C, 1)
    # (kernel_size=1 -> weights squeezed to (out, in)).
    w1 = jax.random.normal(keys[1], (Cr, C), dtype=jnp.float32) * 0.5
    b1 = jax.random.normal(keys[2], (Cr,), dtype=jnp.float32) * 0.1
    w2 = jax.random.normal(keys[3], (C, Cr), dtype=jnp.float32) * 0.5
    b2 = jax.random.normal(keys[4], (C,), dtype=jnp.float32) * 0.1

    ref = _reference(x, w1, b1, w2, b2)

    # Fused single-pass path (default); Bt batches both elements in one grid step.
    out_fused = jax.block_until_ready(se_module(x, w1, b1, w2, b2))
    assert out_fused.shape == ref.shape == (B, C, H, W)
    assert jnp.max(jnp.abs(out_fused - ref)) < 1e-5

    # Fused path with a partial trailing batch block (B=3, batch_tile=2).
    x3 = jax.random.normal(keys[5], (3, C, H, W), dtype=jnp.float32)
    ref3 = _reference(x3, w1, b1, w2, b2)
    out3 = jax.block_until_ready(se_module(x3, w1, b1, w2, b2, batch_tile=2))
    assert jnp.max(jnp.abs(out3 - ref3)) < 1e-5

    # Two-pass tiled path (forced), HW divisible by the tile.
    out_tiled = jax.block_until_ready(
        se_module(x, w1, b1, w2, b2, force_two_pass=True, hw_tile=128))
    assert jnp.max(jnp.abs(out_tiled - ref)) < 1e-5

    # Two-pass tiled path with a masked tail tile (HW = 18*18 = 324, tile = 128).
    B2, C2, H2, W2 = 2, 8, 18, 18
    Cr2 = C2 // 2
    x2 = jax.random.normal(keys[6], (B2, C2, H2, W2), dtype=jnp.float32)
    w1b = jax.random.normal(keys[7], (Cr2, C2), dtype=jnp.float32) * 0.5
    b1b = jax.random.normal(keys[8], (Cr2,), dtype=jnp.float32) * 0.1
    w2b = jax.random.normal(keys[9], (C2, Cr2), dtype=jnp.float32) * 0.5
    b2b = jax.random.normal(keys[10], (C2,), dtype=jnp.float32) * 0.1
    ref2 = _reference(x2, w1b, b1b, w2b, b2b)
    out2 = jax.block_until_ready(
        se_module(x2, w1b, b1b, w2b, b2b, force_two_pass=True, hw_tile=128))
    assert jnp.max(jnp.abs(out2 - ref2)) < 1e-5

    print("KERNEL_OK")
</pallas_src>

<mosaic_0001>
module attributes {stable_mosaic.version = 11 : i64} {
  func.func @_fused_se_kernel(%arg0: i32, %arg1: memref<2x4x256xf32, #tpu.memory_space<vmem>>, %arg2: memref<2x4xf32, #tpu.memory_space<vmem>>, %arg3: memref<1x2xf32, #tpu.memory_space<vmem>>, %arg4: memref<4x2xf32, #tpu.memory_space<vmem>>, %arg5: memref<1x4xf32, #tpu.memory_space<vmem>>, %arg6: memref<2x4x256xf32, #tpu.memory_space<vmem>>) attributes {dimension_semantics = [#tpu.dimension_semantics<parallel>], iteration_bounds = array<i64: 1>, scalar_prefetch = 0 : i64, scratch_operands = 0 : i64, tpu.core_type = #tpu.core_type<tc>, window_params = [{transform_indices = @transform_0, window_bounds = array<i64: 2, 4, 256>}, {pipeline_mode = #tpu.pipeline_mode<synchronous>, transform_indices = @transform_1, window_bounds = array<i64: 2, 4>}, {pipeline_mode = #tpu.pipeline_mode<synchronous>, transform_indices = @transform_2, window_bounds = array<i64: 1, 2>}, {pipeline_mode = #tpu.pipeline_mode<synchronous>, transform_indices = @transform_3, window_bounds = array<i64: 4, 2>}, {pipeline_mode = #tpu.pipeline_mode<synchronous>, transform_indices = @transform_4, window_bounds = array<i64: 1, 4>}, {transform_indices = @transform_5, window_bounds = array<i64: 2, 4, 256>}]} {
    %c0 = arith.constant 0 : index
    %c0_0 = arith.constant 0 : index
    %c0_1 = arith.constant 0 : index
    %0 = vector.load %arg1[%c0, %c0_0, %c0_1] : memref<2x4x256xf32, #tpu.memory_space<vmem>>, vector<2x4x256xf32>
    %cst = arith.constant dense<0.000000e+00> : vector<2x4xf32>
    %1 = vector.multi_reduction <add>, %0, %cst [2] : vector<2x4x256xf32> to vector<2x4xf32>
    %cst_2 = arith.constant 3.906250e-03 : f32
    %2 = vector.broadcast %cst_2 : f32 to vector<2x4xf32>
    %3 = arith.mulf %1, %2 : vector<2x4xf32>
    %c0_3 = arith.constant 0 : index
    %c0_4 = arith.constant 0 : index
    %4 = vector.load %arg2[%c0_3, %c0_4] : memref<2x4xf32, #tpu.memory_space<vmem>>, vector<2x4xf32>
    %cst_5 = arith.constant dense<0.000000e+00> : vector<2x2xf32>
    %5 = tpu.matmul %3, %4, %cst_5 {dimension_numbers = #tpu.dot_dimension_numbers<[1], [1], [0], [0], [0, 0, 1, 0], [], []>} : vector<2x4xf32>, vector<2x4xf32>, vector<2x2xf32> -> vector<2x2xf32>
    %c0_6 = arith.constant 0 : index
    %c0_7 = arith.constant 0 : index
    %6 = vector.load %arg3[%c0_6, %c0_7] : memref<1x2xf32, #tpu.memory_space<vmem>>, vector<1x2xf32>
    %7 = vector.broadcast %6 : vector<1x2xf32> to vector<2x2xf32>
    %8 = arith.addf %5, %7 : vector<2x2xf32>
    %cst_8 = arith.constant 0.000000e+00 : f32
    %9 = vector.broadcast %cst_8 : f32 to vector<2x2xf32>
    %10 = arith.maximumf %8, %9 : vector<2x2xf32>
    %c0_9 = arith.constant 0 : index
    %c0_10 = arith.constant 0 : index
    %11 = vector.load %arg4[%c0_9, %c0_10] : memref<4x2xf32, #tpu.memory_space<vmem>>, vector<4x2xf32>
    %cst_11 = arith.constant dense<0.000000e+00> : vector<2x4xf32>
    %12 = tpu.matmul %10, %11, %cst_11 {dimension_numbers = #tpu.dot_dimension_numbers<[1], [1], [0], [0], [0, 0, 1, 0], [], []>} : vector<2x2xf32>, vector<4x2xf32>, vector<2x4xf32> -> vector<2x4xf32>
    %c0_12 = arith.constant 0 : index
    %c0_13 = arith.constant 0 : index
    %13 = vector.load %arg5[%c0_12, %c0_13] : memref<1x4xf32, #tpu.memory_space<vmem>>, vector<1x4xf32>
    %14 = vector.broadcast %13 : vector<1x4xf32> to vector<2x4xf32>
    %15 = arith.addf %12, %14 : vector<2x4xf32>
    %16 = arith.negf %15 : vector<2x4xf32>
    %17 = math.exp %16 : vector<2x4xf32>
    %cst_14 = arith.constant 1.000000e+00 : f32
    %18 = vector.broadcast %cst_14 : f32 to vector<2x4xf32>
    %19 = arith.addf %18, %17 : vector<2x4xf32>
    %20 = arith.divf %18, %19 : vector<2x4xf32>
    %21 = vector.shape_cast %20 : vector<2x4xf32> to vector<2x4x1xf32>
    %22 = vector.broadcast %21 : vector<2x4x1xf32> to vector<2x4x256xf32>
    %23 = arith.mulf %0, %22 : vector<2x4x256xf32>
    %c0_15 = arith.constant 0 : index
    %c0_16 = arith.constant 0 : index
    %c0_17 = arith.constant 0 : index
    %24 = vector.load %arg6[%c0_15, %c0_16, %c0_17] : memref<2x4x256xf32, #tpu.memory_space<vmem>>, vector<2x4x256xf32>
    tpu.vector_store %arg6[%c0_15, %c0_16, %c0_17], %23 {strides = array<i32>} : memref<2x4x256xf32, #tpu.memory_space<vmem>>, vector<2x4x256xf32>,
    return
  }
  func.func @transform_0(%arg0: i32) -> (i32, i32, i32) {
    %c0_i32 = arith.constant 0 : i32
    %c0_i32_0 = arith.constant 0 : i32
    %c0_i32_1 = arith.constant 0 : i32
    return %arg0, %c0_i32, %c0_i32_0 : i32, i32, i32
  }
  func.func @transform_1(%arg0: i32) -> (i32, i32) {
    %c0_i32 = arith.constant 0 : i32
    %c0_i32_0 = arith.constant 0 : i32
    %c0_i32_1 = arith.constant 0 : i32
    return %c0_i32, %c0_i32_0 : i32, i32
  }
  func.func @transform_2(%arg0: i32) -> (i32, i32) {
    %c0_i32 = arith.constant 0 : i32
    %c0_i32_0 = arith.constant 0 : i32
    %c0_i32_1 = arith.constant 0 : i32
    return %c0_i32, %c0_i32_0 : i32, i32
  }
  func.func @transform_3(%arg0: i32) -> (i32, i32) {
    %c0_i32 = arith.constant 0 : i32
    %c0_i32_0 = arith.constant 0 : i32
    %c0_i32_1 = arith.constant 0 : i32
    return %c0_i32, %c0_i32_0 : i32, i32
  }
  func.func @transform_4(%arg0: i32) -> (i32, i32) {
    %c0_i32 = arith.constant 0 : i32
    %c0_i32_0 = arith.constant 0 : i32
    %c0_i32_1 = arith.constant 0 : i32
    return %c0_i32, %c0_i32_0 : i32, i32
  }
  func.func @transform_5(%arg0: i32) -> (i32, i32, i32) {
    %c0_i32 = arith.constant 0 : i32
    %c0_i32_0 = arith.constant 0 : i32
    %c0_i32_1 = arith.constant 0 : i32
    return %arg0, %c0_i32, %c0_i32_0 : i32, i32, i32
  }
}

</mosaic_0001>

<bundles_post_ra>
// kernel: tpu_custom_call.1
= control target key start
LH: loop header
LB: loop body
LE: loop exit
PB: predicated region body
PF: predicated region fallthrough
CT: control target
= control target key end

     0   :  { %10 = vsyncpa [#allocation3], 0  ;;  %s342_s0 = inlined_call_operand.hbm [shape: f32[2,4,256], index: 0, kind: input, shape index: {}]   ;;  %s343_s1 = inlined_call_operand.vmem [shape: f32[2,4], index: 1, kind: input, shape index: {}]   ;;  %s344_s2 = inlined_call_operand.vmem [shape: f32[1,2], index: 2, kind: input, shape index: {}]   ;;  %s345_s3 = inlined_call_operand.vmem [shape: f32[4,2], index: 3, kind: input, shape index: {}]   ;;  %s346_s4 = inlined_call_operand.vmem [shape: f32[1,4], index: 4, kind: input, shape index: {}]   ;;  %s347_s5 = inlined_call_operand.hbm [shape: f32[2,4,256], index: 5, kind: output, shape index: {}]  }
   0x1   :  { %11 = vsyncpa [#allocation4], 0  ;;  %s16_s20 = sshll.u32 %s342_s0, 4  ;;  %s275_s21 = smov [#allocation2]   ;;  %s17_s20 = int_to_ptr.hbm [resolvable:$true] %s16_s20 }
   0x2   :  { %s18_s22 = sshll.u32 %s275_s21, 4  ;;  %s276_s23 = smov 128   ;;  %s19_s22 = int_to_ptr.vmem [resolvable:$true] %s18_s22 }
   0x3   :  { %s277_s24 = smov 8  }
   0x4   :  { %24 = dma.hbm_to_vmem [thread:$0]  %s17_s20, 256, %s19_s22, [#allocation3], %s276_s23, %s276_s23, %s277_s24  }
   0x5   :  { %271 = dma.done.wait [#allocation3], 256  }
   0x6   :  { %272 = vsyncadd [#allocation3], 4294967040  ;;  %v316_v0 = vld [vmem:[#allocation2] sm:$0xff]  ;;  %v318_v1 = vld [vmem:[#allocation2 + $0x8] sm:$0xff]  ;;  %vm52_vm0 = vcmask 1043456   ;;  %vm78_vm1 = vcmask 31744   ;;  %v72_v14 = vlaneseq }
   0x7   :  { %41 = vst [vmem:[#allocation1] ss:$2 sm:$0xff] %v316_v0  ;;  %v65_v12 = vld [vmem:[%s343_s1] sm:$0x3]  ;;  %vm76_vm2 = vcmask 1041409   ;;  %vm110_vm3 = vcmask 15360  }
   0x8   :  { %45 = vst [vmem:[#allocation1 + $0x10] ss:$2 sm:$0xff] %v318_v1  ;;  %205 = vmatpush.xpose.msk.msra.mxu0 %vm78_vm1, %v65_v12  ;;  %v73_v15 = vand.u32 127, %v72_v14  ;;  %v105_v22 = vld [vmem:[%s345_s3] sm:$0xf]  ;;  %v158_v27 = vshrl.u32 %v72_v14, 7 }
   0x9   :  { %207 = vmatpush.xpose.msk.msra.mxu1 %vm110_vm3, %v105_v22  ;;  %v217_v23 = vld [vmem:[%s344_s2] ss:$0 sm:$0xff]  ;;  %v278_v46 = vmov 839922192   ;;  %s279_s2 = smov [#allocation5]   ;;  %s192_s7 = sshll.u32 %s347_s5, 4  ;;  %s193_s7 = int_to_ptr.hbm [resolvable:$true] %s192_s7 }
   0xa   :  { %215 = vset.pattern.permute.xlu1 %v158_v27  ;;  %216 = vset.pattern.permute.xlu0 %v158_v27  ;;  %v218_v28 = vld [vmem:[%s346_s4] ss:$0 sm:$0xff]  ;;  %v173_v47 = vunpack.c.l.s4 %v278_v46  ;;  %s190_s3 = sshll.u32 %s279_s2, 4  ;;  %s191_s3 = int_to_ptr.vmem [resolvable:$true] %s190_s3 }
   0xc   :  { %v174_v48 = vunpack.c.0.s8 %v173_v47 }
   0xe   :  { %v42_v2 = vld.sshfl [vmem:[#allocation1] sm:$0xff pattern:$0x75316420]  ;;  %v43_v3 = vld.sshfl [vmem:[#allocation1 + $0x8] sm:$0xff pattern:$0x75316420] }
   0xf   :  { %v53_v4 = vsel %vm52_vm0, %v42_v2, 0.0  ;;  %v54_v5 = vsel %vm52_vm0, %v43_v3, 0.0  ;;  %v46_v7 = vld.sshfl [vmem:[#allocation1 + $0x10] sm:$0xff pattern:$0x75316420] }
  0x10   :  { %v55_v6 = vadd.f32 %v54_v5, %v53_v4  ;;  %v47_v8 = vld.sshfl [vmem:[#allocation1 + $0x18] sm:$0xff pattern:$0x75316420]  ;;  %v58_v9 = vsel %vm52_vm0, %v46_v7, 0.0 }
  0x11   :  { %v59_v10 = vsel %vm52_vm0, %v47_v8, 0.0 }
  0x12   :  { %56 = vadd.xlane.f32.xlu0 %v55_v6  ;;  %v60_v11 = vadd.f32 %v59_v10, %v58_v9 }
  0x1a   :  { %61 = vadd.xlane.f32.xlu0 %v60_v11 }
  0x85   :  { %v57_v13 = vpop.xlane.xlu0 %56 }
  0x86   :  { %v63_v16 = vmul.f32 0.00390625, %v57_v13 }
  0x88   :  { %v74_v19 = vperm.slane %v63_v16, %v73_v15 }
  0x8d   :  { %v62_v17 = vpop.xlane.xlu0 %61 }
  0x8e   :  { %v64_v18 = vmul.f32 0.00390625, %v62_v17 }
  0x90   :  { %v75_v20 = vperm.slane %v64_v18, %v73_v15 }
  0x92   :  { %v77_v21 = vsel %vm76_vm2, %v75_v20, %v74_v19 }
  0x93   :  { %206 = vmatmul.msk.f32.vlgmr.msra.gmra.mxu0 %vm78_vm1, %v77_v21 }
 0x110   :  { %v101_v24 = vpop.f32.mrf.mxu0 }
 0x111   :  { %v102_v25 = vadd.f32 %v217_v23, %v101_v24 }
 0x113   :  { %v104_v26 = vmax.f32 %v102_v25, 0.0 }
 0x115   :  { %208 = vmatmul.msk.f32.vlgmr.msra.gmra.mxu1 %vm110_vm3, %v104_v26 }
 0x192   :  { %v134_v29 = vpop.f32.mrf.mxu1 }
 0x193   :  { %v135_v30 = vadd.f32 %v218_v28, %v134_v29 }
 0x195   :  { %v209_v31 = vmul.f32 -1.442695, %v135_v30 }
 0x197   :  { %219 = vpow2.f32 %v209_v31 }
 0x19d   :  { %v220_v32 = vpop.eup %219 }
 0x19e   :  { %v140_v33 = vadd.f32 1.0, %v220_v32 }
 0x1a0   :  { %221 = vrcp.f32 %v140_v33  ;;  %v152_v37 = vand.u32 2147483648, %v140_v33  ;;  %v150_v39 = vand.u32 2147483647, %v140_v33  ;;  %vm146_vm5 = vweird.f32 %v140_v33 }
 0x1a2   :  { %v153_v41 = vor.u32 1.1754944e-38, %v152_v37  ;;  %vm151_vm7 = vcmp.eq.f32.partialorder %v150_v39, 8.507059e+37 }
 0x1a6   :  { %v222_v34 = vpop.eup %221 }
 0x1a7   :  { %v142_v35 = vmul.f32 %v222_v34, %v140_v33  ;;  %vm147_vm4 = vweird.f32 %v222_v34 }
 0x1a8   :  { %vm148_vm6 = vmor %vm146_vm5, %vm147_vm4 }
 0x1a9   :  { %v143_v36 = vsub.f32 1.0, %v142_v35 }
 0x1ab   :  { %v144_v38 = vmul.f32 %v222_v34, %v143_v36 }
 0x1ad   :  { %v145_v40 = vadd.f32 %v222_v34, %v144_v38 }
 0x1af   :  { %v149_v42 = vsel %vm148_vm6, %v222_v34, %v145_v40 }
 0x1b0   :  { %v154_v43 = vsel %vm151_vm7, %v153_v41, %v149_v42 }
 0x1b1   :  { %v156_v44 = vperm.slane %v154_v43, 0  ;;  %v163_v45 = vperm.slane %v154_v43, 1 }
 0x1b3   :  { %161 = vperm.xlu1 %215, %v156_v44  }
 0x1bb   :  { %168 = vperm.xlu1 %215, %v163_v45  }
 0x225   :  { %v162_v49 = vpop.permute.xlu1 %161 }
 0x226   :  { %v175_v50 = vperm.slane %v162_v49, %v174_v48 }
 0x228   :  { %v182_v51 = vmul.f32 %v175_v50, %v316_v0 }
 0x22a   :  { %184 = vst [vmem:[#allocation5] sm:$0xff] %v182_v51 }
 0x22d   :  { %v169_v52 = vpop.permute.xlu1 %168 }
 0x22e   :  { %v179_v53 = vperm.slane %v169_v52, %v174_v48 }
 0x230   :  { %v183_v54 = vmul.f32 %v179_v53, %v318_v1 }
 0x232   :  { %185 = vst [vmem:[#allocation5 + $0x8] sm:$0xff] %v183_v54 }
 0x233   :  { %198 = dma.vmem_to_hbm [thread:$0]  %s191_s3, 256, %s193_s7, [#allocation4], %s276_s23, %s276_s23, %s277_s24  }
 0x234   :  { %273 = dma.done.wait [#allocation4], 256  }
 0x235   :  { %274 = vsyncadd [#allocation4], 4294967040 }
 0x236   :  { %203 = vsyncpa [#allocation3], 1 }
 0x237   :  { %204 = vsyncpa [#allocation4], 1 }

</bundles_post_ra>
